<compile_context>
chip_gen: v5e
topology: v5e:2x2
jax: 0.10.0
libtpu: 0.0.40
codegen_flags: <defaults>
</compile_context>

<pallas_src>
import functools

import jax
import jax.numpy as jnp
from jax.experimental import pallas as pl
from jax.experimental.pallas import tpu as pltpu


LANES = 128
SUBLANES = 8
CHUNK_ROWS = 128  # rows per in-kernel strip (64 KiB f32 live per input)


def _fused_softplus_partial_kernel(*refs, negates, rows_total, block_rows,
                                   need_row_mask):
    """One grid step: out block = (8,128) partial sum of sum_k softplus(+/- x_k)."""
    out_ref = refs[-1]
    x_refs = refs[:-1]
    i = pl.program_id(0)

    acc = jnp.zeros((SUBLANES, LANES), jnp.float32)

    # Static strip-mining over the block (remainder strip handled with its own
    # static size) -- bounds live intermediates to a few vregs per input.
    row = 0
    while row < block_rows:
        ch = min(CHUNK_ROWS, block_rows - row)

        if need_row_mask:
            row_ids = (i * block_rows + row
                       + jax.lax.broadcasted_iota(jnp.int32, (ch, LANES), 0))
            valid = row_ids < rows_total

        for x_ref, neg in zip(x_refs, negates):
            x = x_ref[row:row + ch, :]
            if x.dtype != jnp.float32:
                x = x.astype(jnp.float32)
            if neg:
                x = -x
            # Numerically stable softplus (max + log1p(exp): VPU + EUP).
            sp = jnp.maximum(x, 0.0) + jnp.log1p(jnp.exp(-jnp.abs(x)))
            if need_row_mask:
                sp = jnp.where(valid, sp, 0.0)

            # Tree-reduce (ch,128) -> (8,128): vreg-aligned VPU adds only.
            parts = [sp[k * SUBLANES:(k + 1) * SUBLANES, :]
                     for k in range(ch // SUBLANES)]
            while len(parts) > 1:
                nxt = [a + b for a, b in zip(parts[0::2], parts[1::2])]
                if len(parts) % 2 == 1:
                    nxt.append(parts[-1])
                parts = nxt
            acc = acc + parts[0]

        row += ch

    out_ref[...] = acc


def _pick_block_rows(rows, row_tile, itemsize):
    """Rows per grid step: big enough to amortize pipeline overhead, split so the
    grid has >= 2 steps (v7x megacore), always a multiple of 8."""
    if itemsize <= 2:
        row_tile = row_tile * 2  # keep DMA chunks >= ~512 KiB for 16-bit inputs
    rt = min(int(row_tile), rows)
    if rows >= 2 * SUBLANES:
        rt = min(rt, (rows // 2 // SUBLANES) * SUBLANES)
    rt = max(SUBLANES, (rt // SUBLANES) * SUBLANES)
    return rt


def _softplus_sum_fused(xs, negates, *, row_tile=2048):
    """sum over all k of sum(softplus(+/- xs[k])), as an f32 scalar.

    All xs must have the same number of elements (they share one pipeline)."""
    n = int(xs[0].size)
    assert all(int(x.size) == n for x in xs)

    total = jnp.zeros((), jnp.float32)
    blk = SUBLANES * LANES                    # 1024
    main = (n // blk) * blk                   # kernel part; tail handled in JAX

    # Ragged tail (< 1024 elements): tiny fused XLA op, no full-tensor pad pass.
    if main < n:
        for x, neg in zip(xs, negates):
            t = jax.lax.slice_in_dim(x.reshape(-1), main, n).astype(jnp.float32)
            if neg:
                t = -t
            total = total + jnp.sum(jax.nn.softplus(t))
    if main == 0:
        return total

    rows = main // LANES                      # multiple of 8
    slabs = []
    for x in xs:
        flat = x.reshape(-1)                  # free reshape
        if main < n:
            # Prefix slice only needed for ragged sizes (rare for big tensors).
            flat = jax.lax.slice_in_dim(flat, 0, main)
        slabs.append(flat.reshape(rows, LANES))

    rt = _pick_block_rows(rows, row_tile, xs[0].dtype.itemsize)
    nb = pl.cdiv(rows, rt)
    need_row_mask = (rows % rt) != 0          # mask only emitted when needed

    kernel = functools.partial(
        _fused_softplus_partial_kernel,
        negates=tuple(bool(v) for v in negates),
        rows_total=rows,
        block_rows=rt,
        need_row_mask=need_row_mask,
    )

    partials = pl.pallas_call(
        kernel,
        out_shape=jax.ShapeDtypeStruct((nb * SUBLANES, LANES), jnp.float32),
        grid=(nb,),
        in_specs=[pl.BlockSpec((rt, LANES), lambda i: (i, 0)) for _ in slabs],
        out_specs=pl.BlockSpec((SUBLANES, LANES), lambda i: (i, 0)),
        compiler_params=pltpu.CompilerParams(
            dimension_semantics=("parallel",)   # independent blocks -> megacore
        ),
    )(*slabs)

    return total + jnp.sum(partials)


def discriminator_loss(fake_pred, real_pred, *, row_tile=2048):
    """(BCEWithLogits(fake, 0) + BCEWithLogits(real, 1)) / 2, mean reduction."""
    n_fake = int(fake_pred.size)
    n_real = int(real_pred.size)
    if n_fake == n_real:
        # Common case: one fused launch, both inputs share the pipeline.
        total = _softplus_sum_fused([fake_pred, real_pred], [False, True],
                                    row_tile=row_tile)
        return 0.5 * total / jnp.float32(n_fake)
    # Different element counts -> separate means, separate launches.
    fake_sum = _softplus_sum_fused([fake_pred], [False], row_tile=row_tile)
    real_sum = _softplus_sum_fused([real_pred], [True], row_tile=row_tile)
    return 0.5 * (fake_sum / jnp.float32(n_fake) + real_sum / jnp.float32(n_real))


def _reference(fake_pred, real_pred):
    return 0.5 * (jnp.mean(jax.nn.softplus(fake_pred.astype(jnp.float32)))
                  + jnp.mean(jax.nn.softplus(-real_pred.astype(jnp.float32))))


if __name__ == "__main__":
    key = jax.random.PRNGKey(0)

    # Test 1: standard case (equal shapes -> fused single launch, no masks).
    k1, k2, key = jax.random.split(key, 3)
    fake_pred = jax.random.normal(k1, (2, 4, 16, 16), dtype=jnp.float32)
    real_pred = jax.random.normal(k2, (2, 4, 16, 16), dtype=jnp.float32)
    loss = jax.block_until_ready(jax.jit(discriminator_loss)(fake_pred, real_pred))
    ref = _reference(fake_pred, real_pred)
    assert jnp.allclose(loss, ref, rtol=1e-5, atol=1e-5), (loss, ref)

    # Test 2: row-mask path (rows % block_rows != 0), still fused.
    k1, k2, key = jax.random.split(key, 3)
    fake2 = jax.random.normal(k1, (5, 4, 16, 16), dtype=jnp.float32)
    real2 = jax.random.normal(k2, (5, 4, 16, 16), dtype=jnp.float32)
    loss2 = jax.block_until_ready(jax.jit(discriminator_loss)(fake2, real2))
    ref2 = _reference(fake2, real2)
    assert jnp.allclose(loss2, ref2, rtol=1e-5, atol=1e-5), (loss2, ref2)

    # Test 3: ragged sizes + unequal shapes (separate launches, JAX tail) + bf16.
    k1, k2, key = jax.random.split(key, 3)
    fake3 = jax.random.normal(k1, (3, 1, 30, 30), dtype=jnp.bfloat16)
    real3 = jax.random.normal(k2, (2, 1, 30, 30), dtype=jnp.bfloat16)
    loss3 = jax.block_until_ready(jax.jit(discriminator_loss)(fake3, real3))
    ref3 = _reference(fake3, real3)
    assert jnp.allclose(loss3, ref3, rtol=2e-3, atol=2e-3), (loss3, ref3)

    print("KERNEL_OK")
</pallas_src>

<mosaic_0001>
module attributes {stable_mosaic.version = 11 : i64} {
  func.func @_fused_softplus_partial_kernel(%arg0: i32, %arg1: memref<8x128xf32, #tpu.memory_space<vmem>>, %arg2: memref<8x128xf32, #tpu.memory_space<vmem>>, %arg3: memref<8x128xf32, #tpu.memory_space<vmem>>) attributes {dimension_semantics = [#tpu.dimension_semantics<parallel>], iteration_bounds = array<i64: 2>, scalar_prefetch = 0 : i64, scratch_operands = 0 : i64, tpu.core_type = #tpu.core_type<tc>, window_params = [{transform_indices = @transform_0, window_bounds = array<i64: 8, 128>}, {transform_indices = @transform_1, window_bounds = array<i64: 8, 128>}, {transform_indices = @transform_2, window_bounds = array<i64: 8, 128>}]} {
    %cst = arith.constant 0.000000e+00 : f32
    %0 = vector.broadcast %cst : f32 to vector<8x128xf32>
    %c0 = arith.constant 0 : index
    %c0_0 = arith.constant 0 : index
    %1 = vector.load %arg1[%c0, %c0_0] : memref<8x128xf32, #tpu.memory_space<vmem>>, vector<8x128xf32>
    %cst_1 = arith.constant 0.000000e+00 : f32
    %2 = vector.broadcast %cst_1 : f32 to vector<8x128xf32>
    %3 = arith.maximumf %1, %2 : vector<8x128xf32>
    %4 = math.absf %1 : vector<8x128xf32>
    %cst_2 = arith.constant 0.000000e+00 : f32
    %5 = vector.broadcast %cst_2 : f32 to vector<8x128xf32>
    %6 = arith.subf %5, %4 : vector<8x128xf32>
    %7 = math.exp %6 : vector<8x128xf32>
    %8 = math.log1p %7 : vector<8x128xf32>
    %9 = arith.addf %3, %8 : vector<8x128xf32>
    %10 = arith.addf %0, %9 : vector<8x128xf32>
    %c0_3 = arith.constant 0 : index
    %c0_4 = arith.constant 0 : index
    %11 = vector.load %arg2[%c0_3, %c0_4] : memref<8x128xf32, #tpu.memory_space<vmem>>, vector<8x128xf32>
    %cst_5 = arith.constant 0.000000e+00 : f32
    %12 = vector.broadcast %cst_5 : f32 to vector<8x128xf32>
    %13 = arith.subf %12, %11 : vector<8x128xf32>
    %cst_6 = arith.constant 0.000000e+00 : f32
    %14 = vector.broadcast %cst_6 : f32 to vector<8x128xf32>
    %15 = arith.maximumf %13, %14 : vector<8x128xf32>
    %16 = math.absf %13 : vector<8x128xf32>
    %cst_7 = arith.constant 0.000000e+00 : f32
    %17 = vector.broadcast %cst_7 : f32 to vector<8x128xf32>
    %18 = arith.subf %17, %16 : vector<8x128xf32>
    %19 = math.exp %18 : vector<8x128xf32>
    %20 = math.log1p %19 : vector<8x128xf32>
    %21 = arith.addf %15, %20 : vector<8x128xf32>
    %22 = arith.addf %10, %21 : vector<8x128xf32>
    %c0_8 = arith.constant 0 : index
    %c0_9 = arith.constant 0 : index
    %23 = vector.load %arg3[%c0_8, %c0_9] : memref<8x128xf32, #tpu.memory_space<vmem>>, vector<8x128xf32>
    tpu.vector_store %arg3[%c0_8, %c0_9], %22 {strides = array<i32>} : memref<8x128xf32, #tpu.memory_space<vmem>>, vector<8x128xf32>,
    return
  }
  func.func @transform_0(%arg0: i32) -> (i32, i32) {
    %c0_i32 = arith.constant 0 : i32
    %c0_i32_0 = arith.constant 0 : i32
    return %arg0, %c0_i32 : i32, i32
  }
  func.func @transform_1(%arg0: i32) -> (i32, i32) {
    %c0_i32 = arith.constant 0 : i32
    %c0_i32_0 = arith.constant 0 : i32
    return %arg0, %c0_i32 : i32, i32
  }
  func.func @transform_2(%arg0: i32) -> (i32, i32) {
    %c0_i32 = arith.constant 0 : i32
    %c0_i32_0 = arith.constant 0 : i32
    return %arg0, %c0_i32 : i32, i32
  }
}

</mosaic_0001>

<bundles_post_ra>
// kernel: discriminator_loss.1
= control target key start
LH: loop header
LB: loop body
LE: loop exit
PB: predicated region body
PF: predicated region fallthrough
CT: control target
= control target key end

     0   :  { %s306_s9 = smov 0   ;;  %s331_s0 = inlined_call_operand.vmem [shape: f32[16,128], index: 0, kind: input, shape index: {}]   ;;  %s332_s1 = inlined_call_operand.vmem [shape: f32[16,128], index: 1, kind: input, shape index: {}]   ;;  %s333_s2 = inlined_call_operand.vmem [shape: f32[16,128], index: 2, kind: output, shape index: {}]  }
   0x1 LB: > { %s257_s10 = sadd.s32 4294967295, %s289_s9   ;;  %p261_p0 = scmp.ge.s32.totalorder %s289_s9, 1  ;;  %s289_s9 = sphi %s306_s9, %s12_s9  }
   0x2   : > { %p120_p1 = scmp.lt.s32.totalorder %s289_s9, 3 }
   0x4   : > { %p121_p2 = pnand %p261_p0, %p120_p1 }
   0x5   : > { %p144_p3 = scmp.lt.s32.totalorder (!%p121_p2), %s257_s10, 1 }
   0x6   : > { %124 = sbr.rel (%p121_p2) target bundleno = 48 (0x30), region = 28 }
   0xb   : > { %s335_s10 = smov (!%p144_p3, %s257_s10), 1 }
   0xc   : > { %s314_s11 = sshll.u32 %s335_s10, 3 }
   0xd   : > { %s147_s14 = scalar_lea.vmem %s331_s0, %s314_s11  ;;  %s151_s17 = scalar_lea.vmem %s332_s1, %s314_s11 }
   0xe   : > { %v156_v0 = vld [vmem:[%s147_s14] sm:$0xff]  ;;  %s155_s20 = scalar_lea.vmem %s333_s2, %s314_s11 }
   0xf   : > { %v173_v1 = vld [vmem:[%s151_s17] sm:$0xff]  ;;  %v158_v2 = vand.u32 2147483647, %v156_v0  ;;  %v157_v21 = vmax.f32 %v156_v0, 0.0 }
  0x10   : > { %v174_v3 = vsub.f32 0.0, %v173_v1 }
  0x11   : > { %v159_v4 = vsub.f32 0.0, %v158_v2 }
  0x12   : > { %v176_v5 = vand.u32 2147483647, %v174_v3  ;;  %v175_v25 = vmax.f32 %v174_v3, 0.0 }
  0x13   : > { %v160_v6 = vmul.f32 1.442695, %v159_v4 }
  0x14   : > { %v177_v7 = vsub.f32 0.0, %v176_v5 }
  0x15   : > { %275 = vpow2.f32 %v160_v6 }
  0x16   : > { %v178_v8 = vmul.f32 1.442695, %v177_v7 }
  0x18   : > { %277 = vpow2.f32 %v178_v8 }
  0x1b   : > { %v276_v9 = vpop.eup %275 }
  0x1c   : > { %v162_v10 = vadd.f32 1.0, %v276_v9  ;;  %v165_v11 = vmul.f32 -0.5, %v276_v9  ;;  %v168_v16 = vand.u32 2147483647, %v276_v9 }
  0x1e   : > { %v278_v12 = vpop.eup %277  ;;  %279 = vlog2.f32 %v162_v10  ;;  %v166_v14 = vadd.f32 1.0, %v165_v11  ;;  %vm169_vm0 = vcmp.lt.f32.partialorder %v168_v16, 0.0004427343 }
  0x1f   : > { %v180_v13 = vadd.f32 1.0, %v278_v12  ;;  %v183_v15 = vmul.f32 -0.5, %v278_v12  ;;  %v186_v18 = vand.u32 2147483647, %v278_v12 }
  0x20   : > { %v167_v19 = vmul.f32 %v276_v9, %v166_v14 }
  0x21   : > { %281 = vlog2.f32 %v180_v13  ;;  %v184_v17 = vadd.f32 1.0, %v183_v15  ;;  %vm187_vm1 = vcmp.lt.f32.partialorder %v186_v18, 0.0004427343 }
  0x23   : > { %v185_v23 = vmul.f32 %v278_v12, %v184_v17 }
  0x24   : > { %v280_v20 = vpop.eup %279 }
  0x25   : > { %v164_v22 = vmul.f32 0.6931472, %v280_v20 }
  0x27   : > { %v282_v24 = vpop.eup %281  ;;  %v170_v26 = vsel %vm169_vm0, %v167_v19, %v164_v22 }
  0x28   : > { %v182_v27 = vmul.f32 0.6931472, %v282_v24  ;;  %v171_v28 = vadd.f32 %v170_v26, %v157_v21 }
  0x2a   : > { %v188_v29 = vsel %vm187_vm1, %v185_v23, %v182_v27 }
  0x2b   : > { %v189_v30 = vadd.f32 %v188_v29, %v175_v25 }
  0x2d   : > { %v190_v31 = vadd.f32 %v189_v30, %v171_v28 }
  0x2f   : > { %191 = vst [vmem:[%s155_s20] sm:$0xff] %v190_v31 }
  0x30 PF: > { %s12_s9 = sadd.s32 1, %s289_s9  }
  0x31   : > { %p9_p4 = scmp.ge.s32.totalorder %s12_s9, 4  }
  0x33   :  { %11 = sbr.rel (!%p9_p4) target bundleno = 1 (0x1), region = 61 }

</bundles_post_ra>
